<compile_context>
chip_gen: v7x
topology: tpu7x:2x2x1
jax: 0.10.0
libtpu: 0.0.40
codegen_flags: <defaults>
</compile_context>

<pallas_src>
import functools

import jax
import jax.numpy as jnp
from jax import lax
from jax.experimental import pallas as pl
from jax.experimental.pallas import tpu as pltpu


def _round_up(x, m):
    return ((x + m - 1) // m) * m


def _vmem_limit_bytes():
    """Per-generation scoped-VMEM limit with a safe fallback."""
    cap = None
    try:
        cap = int(pltpu.get_tpu_info().vmem_capacity_bytes)
    except Exception:
        cap = None
    if not cap or cap <= 0:
        cap = 64 * 1024 * 1024  # assume the smallest (v7x per-core) VMEM
    # Leave headroom for compiler-internal scratch; cap at 96 MiB on 128 MiB parts.
    return int(min(cap - 16 * 1024 * 1024, 96 * 1024 * 1024))


def _focal_loss_kernel(x_ref, ta_ref, out_ref, *, gamma, tile_n, n_rows):
    # x_ref:   (TILE_N, C) float logits (any float dtype; cast to f32 here)
    # ta_ref:  (TILE_N, 2) float32; col 0 = target class id, col 1 = alpha
    # out_ref: (1, 1, 1)   float32 per-tile partial sum
    x = x_ref[...].astype(jnp.float32)                        # (TILE_N, C)
    ta = ta_ref[...]                                          # (TILE_N, 2)
    ids = ta[:, 0:1].astype(jnp.int32)                        # (TILE_N, 1)
    alpha = ta[:, 1:2]                                        # (TILE_N, 1) f32

    # target logit via select (no float one-hot multiply)
    col = lax.broadcasted_iota(jnp.int32, x.shape, 1)         # (TILE_N, C)
    x_t = jnp.sum(jnp.where(col == ids, x, 0.0), axis=1, keepdims=True)

    # log-softmax form: log_p = x_t - logsumexp(x); probs = exp(log_p)
    m = jnp.max(x, axis=1, keepdims=True)                     # (TILE_N, 1)
    lse = m + jnp.log(jnp.sum(jnp.exp(x - m), axis=1, keepdims=True))
    log_p = x_t - lse                                         # (TILE_N, 1)
    probs = jnp.exp(log_p)                                    # (TILE_N, 1)

    one_minus = 1.0 - probs
    if isinstance(gamma, int) or (isinstance(gamma, float) and float(gamma).is_integer()):
        focal = lax.integer_pow(one_minus, int(gamma))        # no EUP pow
    else:
        focal = one_minus ** gamma

    batch_loss = -alpha * focal * log_p                       # (TILE_N, 1)

    # Mask padded rows of the last partial tile (static check, free when exact).
    if n_rows % tile_n != 0:
        row = pl.program_id(0) * tile_n + lax.broadcasted_iota(
            jnp.int32, batch_loss.shape, 0
        )
        batch_loss = jnp.where(row < n_rows, batch_loss, 0.0)

    out_ref[...] = jnp.reshape(jnp.sum(batch_loss), (1, 1, 1))


def focal_loss(inputs, targets, alpha, *, gamma=2, size_average=True, tile_n=None):
    """inputs: (N, C) float, targets: (N,) int, alpha: (N, 1) float -> scalar."""
    N, C = inputs.shape
    assert alpha.shape[0] == N, (
        "Focalloss's alpha broadcast requires class_num == N (PyTorch semantics)"
    )

    itemsize = jnp.dtype(inputs.dtype).itemsize
    mult = {4: 8, 2: 16, 1: 32}.get(itemsize, 8)   # sublane-packing multiple
    lane = 128
    c_pad = _round_up(C, lane)                     # lane-padded width in HBM/VMEM
    vmem_limit = _vmem_limit_bytes()

    if tile_n is None:
        # Per-row VMEM estimate: double-buffered logits tile + f32 in-kernel
        # temporaries (~3 copies of the tile) + double-buffered packed
        # targets/alpha column (lane-padded to 128).
        per_row = 2 * c_pad * itemsize + 3 * c_pad * 4 + 2 * lane * 4
        budget = (vmem_limit * 3) // 5             # ~60% of the scoped limit
        tile_n = max(mult, budget // per_row)
    tile_n = max(mult, (int(tile_n) // mult) * mult)
    # Keep >= 2 grid steps when N allows, so ("parallel",) can use both
    # TensorCores on v7x megacore; harmless on single-TC v5e/v6e.
    tile_n = min(tile_n, max(mult, _round_up(pl.cdiv(N, 2), mult)))
    tile_n = min(tile_n, _round_up(N, mult))
    num_tiles = pl.cdiv(N, tile_n)

    # Pack targets + alpha into one lane-shared (N, 2) f32 array: one side DMA
    # per tile and half the x128 lane-padding waste of two (N, 1) columns.
    packed = jnp.concatenate(
        [targets.reshape(N, 1).astype(jnp.float32),
         alpha.reshape(N, 1).astype(jnp.float32)],
        axis=1,
    )

    kernel = functools.partial(
        _focal_loss_kernel, gamma=gamma, tile_n=tile_n, n_rows=N
    )

    partials = pl.pallas_call(
        kernel,
        out_shape=jax.ShapeDtypeStruct((num_tiles, 1, 1), jnp.float32),
        grid=(num_tiles,),
        in_specs=[
            pl.BlockSpec((tile_n, C), lambda i: (i, 0)),   # logits tile
            pl.BlockSpec((tile_n, 2), lambda i: (i, 0)),   # packed targets/alpha
        ],
        out_specs=pl.BlockSpec((1, 1, 1), lambda i: (i, 0, 0)),
        compiler_params=pltpu.CompilerParams(
            dimension_semantics=("parallel",),             # megacore-shardable
            vmem_limit_bytes=vmem_limit,
        ),
    )(inputs, packed)

    total = jnp.sum(partials)                              # num_tiles floats
    return total / N if size_average else total


def focal_loss_reference(inputs, targets, alpha, *, gamma=2, size_average=True):
    """Pure-JAX reference mirroring the PyTorch forward."""
    N, C = inputs.shape
    p = jax.nn.softmax(inputs.astype(jnp.float32), axis=1)
    class_mask = jax.nn.one_hot(targets, C, dtype=jnp.float32)
    probs = jnp.sum(p * class_mask, axis=1, keepdims=True)
    log_p = jnp.log(probs)
    batch_loss = -alpha * (1.0 - probs) ** gamma * log_p
    return jnp.mean(batch_loss) if size_average else jnp.sum(batch_loss)


if __name__ == "__main__":
    gamma = 2
    key = jax.random.PRNGKey(0)

    # Test 1: class_num == N == 16 (multiple of 8); auto tile_n -> 8, 2 tiles,
    # exercising the multi-tile / megacore-parallel path.
    N = 16
    class_num = 16
    k_x, k_t, k_x2, k_t2 = jax.random.split(key, 4)
    inputs = jax.random.normal(k_x, (N, class_num), dtype=jnp.float32)
    targets = jax.random.randint(k_t, (N,), 0, class_num, dtype=jnp.int32)
    alpha = jnp.ones((class_num, 1), dtype=jnp.float32)   # alpha=None branch

    loss = focal_loss(inputs, targets, alpha, gamma=gamma, size_average=True)
    loss = jax.block_until_ready(loss)
    ref = focal_loss_reference(inputs, targets, alpha, gamma=gamma,
                               size_average=True)
    assert jnp.allclose(loss, ref, rtol=1e-5, atol=1e-5), (loss, ref)

    # Test 2: N == 12 (not a multiple of 8) -> partial last tile + row mask.
    N2 = 12
    class_num2 = 12
    inputs2 = jax.random.normal(k_x2, (N2, class_num2), dtype=jnp.float32)
    targets2 = jax.random.randint(k_t2, (N2,), 0, class_num2, dtype=jnp.int32)
    alpha2 = jnp.ones((class_num2, 1), dtype=jnp.float32)

    loss2 = focal_loss(inputs2, targets2, alpha2, gamma=gamma, size_average=True)
    loss2 = jax.block_until_ready(loss2)
    ref2 = focal_loss_reference(inputs2, targets2, alpha2, gamma=gamma,
                                size_average=True)
    assert jnp.allclose(loss2, ref2, rtol=1e-5, atol=1e-5), (loss2, ref2)

    print("KERNEL_OK")
</pallas_src>

<mosaic_0001>
module attributes {stable_mosaic.version = 11 : i64} {
  func.func @_focal_loss_kernel(%arg0: i32, %arg1: memref<8x16xf32, #tpu.memory_space<vmem>>, %arg2: memref<8x2xf32, #tpu.memory_space<vmem>>, %arg3: memref<1x1x1xf32, #tpu.memory_space<vmem>>) attributes {dimension_semantics = [#tpu.dimension_semantics<parallel>], iteration_bounds = array<i64: 2>, scalar_prefetch = 0 : i64, scratch_operands = 0 : i64, tpu.core_type = #tpu.core_type<tc>, window_params = [{transform_indices = @transform_0, window_bounds = array<i64: 8, 16>}, {transform_indices = @transform_1, window_bounds = array<i64: 8, 2>}, {transform_indices = @transform_2, window_bounds = array<i64: 1, 1, 1>}]} {
    %c0 = arith.constant 0 : index
    %c0_0 = arith.constant 0 : index
    %0 = vector.load %arg1[%c0, %c0_0] : memref<8x16xf32, #tpu.memory_space<vmem>>, vector<8x16xf32>
    %c0_1 = arith.constant 0 : index
    %c0_2 = arith.constant 0 : index
    %1 = vector.load %arg2[%c0_1, %c0_2] : memref<8x2xf32, #tpu.memory_space<vmem>>, vector<8x2xf32>
    %2 = vector.extract_strided_slice %1 {offsets = [0, 0], sizes = [8, 1], strides = [1, 1]} : vector<8x2xf32> to vector<8x1xf32>
    %3 = arith.fptosi %2 : vector<8x1xf32> to vector<8x1xi32>
    %4 = vector.extract_strided_slice %1 {offsets = [0, 1], sizes = [8, 1], strides = [1, 1]} : vector<8x2xf32> to vector<8x1xf32>
    %5 = tpu.iota {dimensions = array<i32: 1>} : vector<8x16xi32>
    %6 = vector.broadcast %3 : vector<8x1xi32> to vector<8x16xi32>
    %7 = arith.cmpi eq, %5, %6 : vector<8x16xi32>
    %cst = arith.constant 0.000000e+00 : f32
    %8 = vector.broadcast %cst : f32 to vector<8x16xf32>
    %9 = arith.select %7, %0, %8 : vector<8x16xi1>, vector<8x16xf32>
    %cst_3 = arith.constant dense<0.000000e+00> : vector<8xf32>
    %10 = vector.multi_reduction <add>, %9, %cst_3 [1] : vector<8x16xf32> to vector<8xf32>
    %11 = vector.shape_cast %10 : vector<8xf32> to vector<8x1xf32>
    %cst_4 = arith.constant dense<0xFF800000> : vector<8xf32>
    %12 = vector.multi_reduction <maximumf>, %0, %cst_4 [1] : vector<8x16xf32> to vector<8xf32>
    %13 = vector.shape_cast %12 : vector<8xf32> to vector<8x1xf32>
    %14 = vector.broadcast %13 : vector<8x1xf32> to vector<8x16xf32>
    %15 = arith.subf %0, %14 : vector<8x16xf32>
    %16 = math.exp %15 : vector<8x16xf32>
    %cst_5 = arith.constant dense<0.000000e+00> : vector<8xf32>
    %17 = vector.multi_reduction <add>, %16, %cst_5 [1] : vector<8x16xf32> to vector<8xf32>
    %18 = vector.shape_cast %17 : vector<8xf32> to vector<8x1xf32>
    %19 = math.log %18 : vector<8x1xf32>
    %20 = arith.addf %13, %19 : vector<8x1xf32>
    %21 = arith.subf %11, %20 : vector<8x1xf32>
    %22 = math.exp %21 : vector<8x1xf32>
    %cst_6 = arith.constant 1.000000e+00 : f32
    %23 = vector.broadcast %cst_6 : f32 to vector<8x1xf32>
    %24 = arith.subf %23, %22 : vector<8x1xf32>
    %25 = arith.mulf %24, %24 : vector<8x1xf32>
    %cst_7 = arith.constant 0.000000e+00 : f32
    %26 = vector.broadcast %cst_7 : f32 to vector<8x1xf32>
    %27 = arith.subf %26, %4 : vector<8x1xf32>
    %28 = arith.mulf %27, %25 : vector<8x1xf32>
    %29 = arith.mulf %28, %21 : vector<8x1xf32>
    %30 = vector.shape_cast %29 : vector<8x1xf32> to vector<1x8x1xf32>
    %cst_8 = arith.constant dense<0.000000e+00> : vector<1xf32>
    %31 = vector.multi_reduction <add>, %30, %cst_8 [1, 2] : vector<1x8x1xf32> to vector<1xf32>
    %32 = vector.shape_cast %31 : vector<1xf32> to vector<1x1x1xf32>
    %33 = vector.extract %32[0, 0, 0] : f32 from vector<1x1x1xf32>
    %34 = vector.broadcast %33 : f32 to vector<1x1x1xf32>
    %c0_9 = arith.constant 0 : index
    %c0_10 = arith.constant 0 : index
    %c0_11 = arith.constant 0 : index
    %35 = vector.load %arg3[%c0_9, %c0_10, %c0_11] : memref<1x1x1xf32, #tpu.memory_space<vmem>>, vector<1x1x1xf32>
    tpu.vector_store %arg3[%c0_9, %c0_10, %c0_11], %34 {strides = array<i32>} : memref<1x1x1xf32, #tpu.memory_space<vmem>>, vector<1x1x1xf32>,
    return
  }
  func.func @transform_0(%arg0: i32) -> (i32, i32) {
    %c0_i32 = arith.constant 0 : i32
    %c0_i32_0 = arith.constant 0 : i32
    return %arg0, %c0_i32 : i32, i32
  }
  func.func @transform_1(%arg0: i32) -> (i32, i32) {
    %c0_i32 = arith.constant 0 : i32
    %c0_i32_0 = arith.constant 0 : i32
    return %arg0, %c0_i32 : i32, i32
  }
  func.func @transform_2(%arg0: i32) -> (i32, i32, i32) {
    %c0_i32 = arith.constant 0 : i32
    %c0_i32_0 = arith.constant 0 : i32
    %c0_i32_1 = arith.constant 0 : i32
    return %arg0, %c0_i32, %c0_i32_0 : i32, i32, i32
  }
}

</mosaic_0001>

<bundles_post_ra>
// kernel: tpu_custom_call.1
= control target key start
LH: loop header
LB: loop body
LE: loop exit
PB: predicated region body
PF: predicated region fallthrough
CT: control target
= control target key end

     0   :  { %s320_s9 = smov 0   ;;  %s347_s0 = inlined_call_operand.vmem [shape: f32[16,16], index: 0, kind: input, shape index: {}]   ;;  %s348_s1 = inlined_call_operand.vmem [shape: f32[16,2], index: 1, kind: input, shape index: {}]   ;;  %s349_s2 = inlined_call_operand.vmem [shape: f32[2,1,1], index: 2, kind: output, shape index: {}]  }
   0x1 LB: > { %s265_s10 = sadd.s32 4294967295, %s301_s9   ;;  %p269_p0 = scmp.ge.s32.totalorder %s301_s9, 1  ;;  %s301_s9 = sphi %s320_s9, %s12_s9  }
   0x2   : > { %p120_p1 = scmp.lt.s32.totalorder %s301_s9, 3 }
   0x4   : > { %p121_p2 = pnand %p269_p0, %p120_p1 }
   0x5   : > { %p143_p3 = scmp.lt.s32.totalorder (!%p121_p2), %s265_s10, 1  ;;  %v303_v0 = vmov (!%p121_p2), 0   ;;  %vm164_vm0 = vcmask (!%p121_p2), 130048   ;;  %v157_v9 = vlaneseq (!%p121_p2)  ;;  %s304_s18 = smov (!%p121_p2), 127   ;;  %vm192_vm2 = vcmask (!%p121_p2), 7168  }
   0x6   : > { %124 = sbr.rel (%p121_p2) target bundleno = 678 (0x2a6), region = 28  ;;  %288 = vset.pattern.permute.xlu0 (!%p121_p2), %v303_v0  ;;  %vm204_vm3 = vcmask (!%p121_p2), 0  }
   0x7   : > { %v158_v10 = vand.u32 (!%p121_p2), 127, %v157_v9 }
   0xd   : > { %s351_s10 = smov (!%p143_p3, %s265_s10), 1 }
   0xe   : > { %s270_s11 = sshll.u32 %s351_s10, 3  ;;  %s153_s21 = scalar_lea.vmem %s349_s2, %s351_s10 }
   0xf   : > { %s146_s14 = scalar_lea.vmem %s347_s0, %s270_s11  ;;  %s150_s17 = scalar_lea.vmem %s348_s1, %s270_s11 }
  0x10   : > { %v154_v1 = vld [vmem:[%s146_s14] sm:$0xff] }
  0x11   : > { %v168_v2 = vsel %vm164_vm0, %v154_v1, -inf  ;;  %v155_v3 = vld [vmem:[%s150_s17] sm:$0xff] }
  0x12   : > { %169 = vmax.xlane.f32.xlu0 %v168_v2  ;;  %v274_v4 = vtrunc.f32 %v155_v3  ;;  %v185_v24 = vsub.f32 0.0, %v155_v3 }
  0x14   : > { %v275_v5 = vcvt.f32.s32 %v274_v4 }
  0x28   : > { %160 = vperm.xlu0 %288, %v275_v5  }
  0x9f   : > { %v170_v6 = vpop.xlane.xlu0 %169 }
  0xa0   : > { %v171_v7 = vsub.f32 %v154_v1, %v170_v6 }
  0xa2   : > { %v172_v8 = vmul.f32 1.442695, %v171_v7 }
  0xa4   : > { %289 = vpow2.f32 %v172_v8 }
  0xa7   : > { %v161_v11 = vpop.permute.xlu0 %160 }
  0xa8   : > { %vm162_vm1 = vcmp.eq.s32.totalorder %v158_v10, %v161_v11 }
  0xa9   : > { %v163_v13 = vsel %vm162_vm1, %v154_v1, 0.0 }
  0xaa   : > { %v165_v15 = vsel %vm164_vm0, %v163_v13, 0.0 }
  0xae   : > { %v290_v12 = vpop.eup %289 }
  0xaf   : > { %v174_v14 = vsel %vm164_vm0, %v290_v12, 0.0 }
  0xb0   : > { %175 = vadd.xlane.f32.xlu1 %v174_v14 }
  0xb4   : > { %166 = vadd.xlane.f32.xlu1 %v165_v15 }
 0x13d   : > { %v176_v16 = vpop.xlane.xlu1 %175 }
 0x13e   : > { %291 = vlog2.f32 %v176_v16 }
 0x141   : > { %v167_v19 = vpop.xlane.xlu1 %166 }
 0x148   : > { %v292_v17 = vpop.eup %291 }
 0x149   : > { %v178_v18 = vmul.f32 0.6931472, %v292_v17 }
 0x14b   : > { %v179_v20 = vadd.f32 %v178_v18, %v170_v6 }
 0x14d   : > { %v180_v21 = vsub.f32 %v167_v19, %v179_v20 }
 0x14f   : > { %v181_v22 = vmul.f32 1.442695, %v180_v21 }
 0x151   : > { %293 = vpow2.f32 %v181_v22 }
 0x15b   : > { %v294_v23 = vpop.eup %293 }
 0x15c   : > { %v183_v25 = vsub.f32 1.0, %v294_v23 }
 0x15e   : > { %v184_v26 = vmul.f32 %v183_v25, %v183_v25 }
 0x160   : > { %v186_v27 = vmul.f32 %v185_v24, %v184_v26 }
 0x162   : > { %v187_v28 = vmul.f32 %v186_v27, %v180_v21 }
 0x164   : > { %189 = vrot.lane.b32.xlu1 %v187_v28, %s304_s18 }
 0x1d6   : > { %v190_v29 = vpop.permute.xlu1 %189 }
 0x1d7   : > { %v193_v30 = vsel %vm192_vm2, %v190_v29, 0.0 }
 0x1d8   : > { %194 = vadd.xlane.f32.xlu1 %v193_v30 }
 0x265   : > { %v195_v31 = vpop.xlane.xlu1 %194 }
 0x266   : > { %v196_v32 = vrot.slane %v195_v31, 4 }
 0x268   : > { %v197_v33 = vadd.f32 %v196_v32, %v195_v31 }
 0x26a   : > { %v198_v34 = vrot.slane %v197_v33, 2 }
 0x26c   : > { %v199_v35 = vadd.f32 %v198_v34, %v197_v33 }
 0x26e   : > { %v200_v36 = vrot.slane %v199_v35, 1 }
 0x270   : > { %v201_v37 = vadd.f32 %v200_v36, %v199_v35 }
 0x272   : > { %276 = vpush %v201_v37 }
 0x2a3   : > { %s277_s22 = spop %276 }
 0x2a4   : > { %v203_v38 = vstv %s277_s22 }
 0x2a5   : > { %205 = vst.msk [vmem:[%s153_s21] sm:$0x1] %vm204_vm3, %v203_v38 }
 0x2a6 PF: > { %s12_s9 = sadd.s32 1, %s301_s9  }
 0x2a7   : > { %p9_p4 = scmp.ge.s32.totalorder %s12_s9, 4  }
 0x2a9   :  { %11 = sbr.rel (!%p9_p4) target bundleno = 1 (0x1), region = 61 }

</bundles_post_ra>
